<compile_context>
chip_gen: v5e
topology: v5e:2x2
jax: 0.10.0
libtpu: 0.0.40
codegen_flags: <defaults>
</compile_context>

<pallas_src>
import functools

import jax
import jax.numpy as jnp
import numpy as np
from jax.experimental import pallas as pl
from jax.experimental.pallas import tpu as pltpu


def _round_up(v, m):
    return ((v + m - 1) // m) * m


def _weight_norm(v, g):
    """PyTorch weight_norm (dim=0): w = g * v / ||v||_{dims != 0}."""
    norm = jnp.sqrt(jnp.sum(v * v, axis=(1, 2), keepdims=True))
    return g * v / norm


def _wn_kernel(len_ref, xwin_ref, x_ref, g_ref,
               wall_ref, wout_ref, bpre_ref, bout_ref,
               out_ref, slab_ref, *, kernel_size, dilation, hidden):
    b = pl.program_id(0)
    t = pl.program_id(1)
    tT = x_ref.shape[1]
    Cin = x_ref.shape[2]
    H = hidden

    # ---- im2col: pack the K dilated taps + speaker features into one bf16
    # slab so the whole pre-activation is a single deep MXU matmul. ----------
    for k in range(kernel_size):
        off = k * dilation
        slab_ref[:, k * Cin:(k + 1) * Cin] = xwin_ref[0, 0, off:off + tT, :]
    slab_ref[:, kernel_size * Cin:] = g_ref[0]

    # (tT, K*Cin + Cspk) @ (K*Cin + Cspk, 2H), f32 accumulation, fused bias.
    acc = jnp.dot(slab_ref[...], wall_ref[...],
                  preferred_element_type=jnp.float32) + bpre_ref[...]

    # Gated activation unit (chunk(2, dim=channels)).
    gated = jnp.tanh(acc[:, :H]) * jax.nn.sigmoid(acc[:, H:])

    # out 1x1 conv producing [out | skip] as a lane-dense (tT, 2H) slab.
    o = jnp.dot(gated.astype(jnp.bfloat16), wout_ref[...],
                preferred_element_type=jnp.float32) + bout_ref[...]

    # Residual (f32) only into the "out" half -- no zeros/concat temporaries.
    o_out = o[:, :H] + x_ref[0]
    o_skip = o[:, H:]

    # Length mask from scalar-prefetched lengths; unmasked store on the
    # common (fully-valid tile) path.
    seq_len = len_ref[b]
    fully_valid = (t + 1) * tT <= seq_len

    @pl.when(fully_valid)
    def _():
        out_ref[0, :, :H] = o_out.astype(out_ref.dtype)
        out_ref[0, :, H:] = o_skip.astype(out_ref.dtype)

    @pl.when(jnp.logical_not(fully_valid))
    def _():
        row = t * tT + jax.lax.broadcasted_iota(jnp.int32, (tT, 1), 0)
        mask = (row < seq_len).astype(jnp.float32)
        out_ref[0, :, :H] = (o_out * mask).astype(out_ref.dtype)
        out_ref[0, :, H:] = (o_skip * mask).astype(out_ref.dtype)


def wn_layer_forward(x, x_mask, g, params, *, kernel_size=5, dilation=1,
                     time_tile=1024, out_dtype=None,
                     vmem_limit_bytes=48 * 1024 * 1024):
    """x: (B, Cin, T), x_mask: (B, 1, T) prefix mask, g: (B, Cspk, T)  (NCL).

    time_tile=1024 is a good default on v5e/v6e (128 MiB VMEM); on v7x
    (64 MiB VMEM) keep time_tile <= 1024 / lower vmem_limit_bytes.  Pass
    out_dtype=jnp.bfloat16 to halve the output HBM stream if downstream
    layers tolerate it (v6e is HBM-bound here).
    """
    B, Cin, T = x.shape
    Cspk = g.shape[1]
    pad = dilation * (kernel_size - 1) // 2

    # ---- weight-norm + fused / reshaped weights (parameter glue) -----------
    w_conv = _weight_norm(params["conv_v"], params["conv_g"])   # (2H, Cin, K)
    w_spk = _weight_norm(params["spk_v"], params["spk_g"])      # (2H, Cspk, 1)
    w_out = _weight_norm(params["out_v"], params["out_g"])      # (2H, H, 1)
    H2 = w_conv.shape[0]
    H = H2 // 2
    assert Cin == H, "residual add requires Cin == hidden_channels"

    # Fused pre-activation weight: [conv tap0..K-1 | speaker] rows.
    wc_col = jnp.transpose(w_conv, (2, 1, 0)).reshape(kernel_size * Cin, H2)
    wsp = jnp.transpose(w_spk[:, :, 0], (1, 0))                 # (Cspk, 2H)
    w_all = jnp.concatenate([wc_col, wsp], axis=0).astype(jnp.bfloat16)
    wo = jnp.transpose(w_out[:, :, 0], (1, 0)).astype(jnp.bfloat16)   # (H, 2H)
    bpre = (params["conv_b"] + params["spk_b"]).reshape(1, H2).astype(jnp.float32)
    bout = params["out_b"].reshape(1, H2).astype(jnp.float32)

    # ---- activations: NCL -> BTC; pad T to a multiple of the time tile -----
    x_btc = jnp.transpose(x, (0, 2, 1))                         # (B, T, Cin) f32
    g_btc = jnp.transpose(g, (0, 2, 1)).astype(jnp.bfloat16)    # (B, T, Cspk)

    tT = min(time_tile, _round_up(T, 8))        # time tile (mult of 8 sublanes)
    Tp = _round_up(T, tT)
    nT = Tp // tT
    x_pad = jnp.pad(x_btc, ((0, 0), (0, Tp - T), (0, 0)), mode="edge")
    g_pad = jnp.pad(g_btc, ((0, 0), (0, Tp - T), (0, 0)), mode="edge")

    # Overlapping replicate-padded bf16 windows (matmul stream).  The f32
    # x_pad stream above is kept only for the f32 residual add.
    xp_full = jnp.pad(x_pad, ((0, 0), (pad, pad), (0, 0)), mode="edge")
    xwin = jnp.stack(
        [xp_full[:, i * tT:i * tT + tT + 2 * pad] for i in range(nT)],
        axis=1).astype(jnp.bfloat16)                   # (B, nT, tT+2*pad, Cin)

    # Sequence lengths (assumes x_mask is a prefix/length mask, as in VITS).
    lengths = jnp.sum(x_mask, axis=(1, 2)).astype(jnp.int32)    # (B,)

    out_dt = x.dtype if out_dtype is None else out_dtype

    kernel = functools.partial(_wn_kernel, kernel_size=kernel_size,
                               dilation=dilation, hidden=H)

    def _const(shape):
        return pl.BlockSpec(shape, lambda b, t, L, _n=len(shape): (0,) * _n)

    out2h = pl.pallas_call(
        kernel,
        out_shape=jax.ShapeDtypeStruct((B, Tp, H2), out_dt),
        grid_spec=pltpu.PrefetchScalarGridSpec(
            num_scalar_prefetch=1,          # lengths -> SMEM
            grid=(B, nT),
            in_specs=[
                pl.BlockSpec((1, 1, tT + 2 * pad, Cin),
                             lambda b, t, L: (b, t, 0, 0)),
                pl.BlockSpec((1, tT, Cin), lambda b, t, L: (b, t, 0)),
                pl.BlockSpec((1, tT, Cspk), lambda b, t, L: (b, t, 0)),
                _const((kernel_size * Cin + Cspk, H2)),
                _const((H, H2)),
                _const((1, H2)),
                _const((1, H2)),
            ],
            out_specs=pl.BlockSpec((1, tT, H2), lambda b, t, L: (b, t, 0)),
            scratch_shapes=[
                pltpu.VMEM((tT, kernel_size * Cin + Cspk), jnp.bfloat16)],
        ),
        compiler_params=pltpu.CompilerParams(
            dimension_semantics=("parallel", "parallel"),
            vmem_limit_bytes=vmem_limit_bytes,
        ),
    )(lengths, xwin, x_pad, g_pad, w_all, wo, bpre, bout)

    # Split the lane-dense [out | skip] slab, crop to T, back to NCL layout.
    out = jnp.transpose(out2h[:, :T, :H], (0, 2, 1)).astype(x.dtype)
    skip = jnp.transpose(out2h[:, :T, H:], (0, 2, 1)).astype(x.dtype)
    return out, skip


def wn_layer_reference(x, x_mask, g, params, *, kernel_size=5, dilation=1):
    """Pure-JAX f32 reference of the PyTorch forward (NCL layout)."""
    w_conv = _weight_norm(params["conv_v"], params["conv_g"])
    w_spk = _weight_norm(params["spk_v"], params["spk_g"])
    w_out = _weight_norm(params["out_v"], params["out_g"])
    H = w_conv.shape[0] // 2
    pad = dilation * (kernel_size - 1) // 2
    B, _, T = x.shape

    xp = jnp.pad(x, ((0, 0), (0, 0), (pad, pad)), mode="edge")
    conv = jnp.zeros((B, 2 * H, T), jnp.float32)
    for k in range(kernel_size):
        off = k * dilation
        conv = conv + jnp.einsum("oc,bct->bot", w_conv[:, :, k], xp[:, :, off:off + T])
    conv = conv + params["conv_b"][None, :, None]
    spk = jnp.einsum("oc,bct->bot", w_spk[:, :, 0], g) + params["spk_b"][None, :, None]
    pre = conv + spk
    x0, x1 = pre[:, :H], pre[:, H:]
    gated = jnp.tanh(x0) * jax.nn.sigmoid(x1)
    o = jnp.einsum("oc,bct->bot", w_out[:, :, 0], gated) + params["out_b"][None, :, None]
    out, skip = o[:, :H], o[:, H:]
    return (out + x) * x_mask, skip * x_mask


if __name__ == "__main__":
    B, T = 2, 40
    hidden = 32          # hidden_channels (scaled down from 192)
    spk_dim = 64         # speaker_embedding_dim (scaled down from 256)
    kernel_size, dilation = 5, 1

    key = jax.random.PRNGKey(0)
    keys = jax.random.split(key, 11)
    params = {
        "conv_v": jax.random.normal(keys[0], (2 * hidden, hidden, kernel_size), jnp.float32) * 0.1,
        "conv_g": jax.random.uniform(keys[1], (2 * hidden, 1, 1), jnp.float32, 0.5, 1.5),
        "conv_b": jax.random.normal(keys[2], (2 * hidden,), jnp.float32) * 0.1,
        "spk_v": jax.random.normal(keys[3], (2 * hidden, spk_dim, 1), jnp.float32) * 0.1,
        "spk_g": jax.random.uniform(keys[4], (2 * hidden, 1, 1), jnp.float32, 0.5, 1.5),
        "spk_b": jax.random.normal(keys[5], (2 * hidden,), jnp.float32) * 0.1,
        "out_v": jax.random.normal(keys[6], (2 * hidden, hidden, 1), jnp.float32) * 0.1,
        "out_g": jax.random.uniform(keys[7], (2 * hidden, 1, 1), jnp.float32, 0.5, 1.5),
        "out_b": jax.random.normal(keys[8], (2 * hidden,), jnp.float32) * 0.1,
    }

    x = jax.random.normal(keys[9], (B, hidden, T), jnp.float32)
    g = jax.random.normal(keys[10], (B, spk_dim, T), jnp.float32)
    lengths = jnp.array([29, 40])
    x_mask = (jnp.arange(T)[None, :] < lengths[:, None]).astype(jnp.float32)[:, None, :]

    # Small time_tile so the test exercises multiple time tiles, the
    # overlapping-window path, the masked boundary tile and the
    # T-not-divisible-by-tile path (T=40, tT=16 -> 3 tiles).
    out, skip = wn_layer_forward(x, x_mask, g, params,
                                 kernel_size=kernel_size, dilation=dilation,
                                 time_tile=16)
    out = jax.block_until_ready(out)
    skip = jax.block_until_ready(skip)

    out_ref, skip_ref = wn_layer_reference(x, x_mask, g, params,
                                           kernel_size=kernel_size, dilation=dilation)
    # bf16 matmul operands with f32 accumulation -> loosened tolerances.
    np.testing.assert_allclose(np.asarray(out), np.asarray(out_ref), rtol=3e-2, atol=3e-2)
    np.testing.assert_allclose(np.asarray(skip), np.asarray(skip_ref), rtol=3e-2, atol=3e-2)

    print("KERNEL_OK")
</pallas_src>

<mosaic_0001>
module attributes {stable_mosaic.version = 11 : i64} {
  func.func @_wn_kernel(%arg0: i32, %arg1: i32, %arg2: memref<2xi32, #tpu.memory_space<smem>>, %arg3: memref<1x1x20x32xbf16, #tpu.memory_space<vmem>>, %arg4: memref<1x16x32xf32, #tpu.memory_space<vmem>>, %arg5: memref<1x16x64xbf16, #tpu.memory_space<vmem>>, %arg6: memref<224x64xbf16, #tpu.memory_space<vmem>>, %arg7: memref<32x64xbf16, #tpu.memory_space<vmem>>, %arg8: memref<1x64xf32, #tpu.memory_space<vmem>>, %arg9: memref<1x64xf32, #tpu.memory_space<vmem>>, %arg10: memref<1x16x64xf32, #tpu.memory_space<vmem>>, %arg11: memref<16x224xbf16, #tpu.memory_space<vmem>>) attributes {dimension_semantics = [#tpu.dimension_semantics<parallel>, #tpu.dimension_semantics<parallel>], iteration_bounds = array<i64: 2, 3>, scalar_prefetch = 1 : i64, scratch_operands = 1 : i64, tpu.core_type = #tpu.core_type<tc>, window_params = [{transform_indices = @transform_0, window_bounds = array<i64: 1, 1, 20, 32>}, {transform_indices = @transform_1, window_bounds = array<i64: 1, 16, 32>}, {transform_indices = @transform_2, window_bounds = array<i64: 1, 16, 64>}, {pipeline_mode = #tpu.pipeline_mode<synchronous>, transform_indices = @transform_3, window_bounds = array<i64: 224, 64>}, {pipeline_mode = #tpu.pipeline_mode<synchronous>, transform_indices = @transform_4, window_bounds = array<i64: 32, 64>}, {pipeline_mode = #tpu.pipeline_mode<synchronous>, transform_indices = @transform_5, window_bounds = array<i64: 1, 64>}, {pipeline_mode = #tpu.pipeline_mode<synchronous>, transform_indices = @transform_6, window_bounds = array<i64: 1, 64>}, {transform_indices = @transform_7, window_bounds = array<i64: 1, 16, 64>}]} {
    %c0 = arith.constant 0 : index
    %c0_0 = arith.constant 0 : index
    %c0_1 = arith.constant 0 : index
    %c0_2 = arith.constant 0 : index
    %0 = vector.load %arg3[%c0, %c0_0, %c0_1, %c0_2] : memref<1x1x20x32xbf16, #tpu.memory_space<vmem>>, vector<1x1x16x32xbf16>
    %1 = vector.shape_cast %0 : vector<1x1x16x32xbf16> to vector<16x32xbf16>
    %c0_3 = arith.constant 0 : index
    %c0_4 = arith.constant 0 : index
    %2 = vector.load %arg11[%c0_3, %c0_4] : memref<16x224xbf16, #tpu.memory_space<vmem>>, vector<16x32xbf16>
    tpu.vector_store %arg11[%c0_3, %c0_4], %1 {strides = array<i32>} : memref<16x224xbf16, #tpu.memory_space<vmem>>, vector<16x32xbf16>,
    %c0_5 = arith.constant 0 : index
    %c0_6 = arith.constant 0 : index
    %c1 = arith.constant 1 : index
    %c0_7 = arith.constant 0 : index
    %3 = vector.load %arg3[%c0_5, %c0_6, %c1, %c0_7] : memref<1x1x20x32xbf16, #tpu.memory_space<vmem>>, vector<1x1x16x32xbf16>
    %4 = vector.shape_cast %3 : vector<1x1x16x32xbf16> to vector<16x32xbf16>
    %c0_8 = arith.constant 0 : index
    %c32 = arith.constant 32 : index
    %5 = vector.load %arg11[%c0_8, %c32] : memref<16x224xbf16, #tpu.memory_space<vmem>>, vector<16x32xbf16>
    tpu.vector_store %arg11[%c0_8, %c32], %4 {strides = array<i32>} : memref<16x224xbf16, #tpu.memory_space<vmem>>, vector<16x32xbf16>,
    %c0_9 = arith.constant 0 : index
    %c0_10 = arith.constant 0 : index
    %c2 = arith.constant 2 : index
    %c0_11 = arith.constant 0 : index
    %6 = vector.load %arg3[%c0_9, %c0_10, %c2, %c0_11] : memref<1x1x20x32xbf16, #tpu.memory_space<vmem>>, vector<1x1x16x32xbf16>
    %7 = vector.shape_cast %6 : vector<1x1x16x32xbf16> to vector<16x32xbf16>
    %c0_12 = arith.constant 0 : index
    %c64 = arith.constant 64 : index
    %8 = vector.load %arg11[%c0_12, %c64] : memref<16x224xbf16, #tpu.memory_space<vmem>>, vector<16x32xbf16>
    tpu.vector_store %arg11[%c0_12, %c64], %7 {strides = array<i32>} : memref<16x224xbf16, #tpu.memory_space<vmem>>, vector<16x32xbf16>,
    %c0_13 = arith.constant 0 : index
    %c0_14 = arith.constant 0 : index
    %c3 = arith.constant 3 : index
    %c0_15 = arith.constant 0 : index
    %9 = vector.load %arg3[%c0_13, %c0_14, %c3, %c0_15] : memref<1x1x20x32xbf16, #tpu.memory_space<vmem>>, vector<1x1x16x32xbf16>
    %10 = vector.shape_cast %9 : vector<1x1x16x32xbf16> to vector<16x32xbf16>
    %c0_16 = arith.constant 0 : index
    %c96 = arith.constant 96 : index
    %11 = vector.load %arg11[%c0_16, %c96] : memref<16x224xbf16, #tpu.memory_space<vmem>>, vector<16x32xbf16>
    tpu.vector_store %arg11[%c0_16, %c96], %10 {strides = array<i32>} : memref<16x224xbf16, #tpu.memory_space<vmem>>, vector<16x32xbf16>,
    %c0_17 = arith.constant 0 : index
    %c0_18 = arith.constant 0 : index
    %c4 = arith.constant 4 : index
    %c0_19 = arith.constant 0 : index
    %12 = vector.load %arg3[%c0_17, %c0_18, %c4, %c0_19] : memref<1x1x20x32xbf16, #tpu.memory_space<vmem>>, vector<1x1x16x32xbf16>
    %13 = vector.shape_cast %12 : vector<1x1x16x32xbf16> to vector<16x32xbf16>
    %c0_20 = arith.constant 0 : index
    %c128 = arith.constant 128 : index
    %14 = vector.load %arg11[%c0_20, %c128] : memref<16x224xbf16, #tpu.memory_space<vmem>>, vector<16x32xbf16>
    tpu.vector_store %arg11[%c0_20, %c128], %13 {strides = array<i32>} : memref<16x224xbf16, #tpu.memory_space<vmem>>, vector<16x32xbf16>,
    %c0_21 = arith.constant 0 : index
    %c0_22 = arith.constant 0 : index
    %c0_23 = arith.constant 0 : index
    %15 = vector.load %arg5[%c0_21, %c0_22, %c0_23] : memref<1x16x64xbf16, #tpu.memory_space<vmem>>, vector<1x16x64xbf16>
    %16 = vector.shape_cast %15 : vector<1x16x64xbf16> to vector<16x64xbf16>
    %c0_24 = arith.constant 0 : index
    %c160 = arith.constant 160 : index
    %17 = vector.load %arg11[%c0_24, %c160] : memref<16x224xbf16, #tpu.memory_space<vmem>>, vector<16x64xbf16>
    tpu.vector_store %arg11[%c0_24, %c160], %16 {strides = array<i32>} : memref<16x224xbf16, #tpu.memory_space<vmem>>, vector<16x64xbf16>,
    %c0_25 = arith.constant 0 : index
    %c0_26 = arith.constant 0 : index
    %18 = vector.load %arg11[%c0_25, %c0_26] : memref<16x224xbf16, #tpu.memory_space<vmem>>, vector<16x224xbf16>
    %c0_27 = arith.constant 0 : index
    %c0_28 = arith.constant 0 : index
    %19 = vector.load %arg6[%c0_27, %c0_28] : memref<224x64xbf16, #tpu.memory_space<vmem>>, vector<224x64xbf16>
    %cst = arith.constant dense<0.000000e+00> : vector<16x64xf32>
    %20 = tpu.matmul %18, %19, %cst {dimension_numbers = #tpu.dot_dimension_numbers<[1], [0], [0], [1], [0, 0, 1, 1], [], []>} : vector<16x224xbf16>, vector<224x64xbf16>, vector<16x64xf32> -> vector<16x64xf32>
    %c0_29 = arith.constant 0 : index
    %c0_30 = arith.constant 0 : index
    %21 = vector.load %arg8[%c0_29, %c0_30] : memref<1x64xf32, #tpu.memory_space<vmem>>, vector<1x64xf32>
    %22 = vector.broadcast %21 : vector<1x64xf32> to vector<16x64xf32>
    %23 = arith.addf %20, %22 : vector<16x64xf32>
    %24 = vector.extract_strided_slice %23 {offsets = [0, 0], sizes = [16, 32], strides = [1, 1]} : vector<16x64xf32> to vector<16x32xf32>
    %25 = math.tanh %24 : vector<16x32xf32>
    %26 = vector.extract_strided_slice %23 {offsets = [0, 32], sizes = [16, 32], strides = [1, 1]} : vector<16x64xf32> to vector<16x32xf32>
    %27 = arith.negf %26 : vector<16x32xf32>
    %28 = math.exp %27 : vector<16x32xf32>
    %cst_31 = arith.constant 1.000000e+00 : f32
    %29 = vector.broadcast %cst_31 : f32 to vector<16x32xf32>
    %30 = arith.addf %29, %28 : vector<16x32xf32>
    %31 = arith.divf %29, %30 : vector<16x32xf32>
    %32 = arith.mulf %25, %31 : vector<16x32xf32>
    %33 = arith.truncf %32 : vector<16x32xf32> to vector<16x32xbf16>
    %c0_32 = arith.constant 0 : index
    %c0_33 = arith.constant 0 : index
    %34 = vector.load %arg7[%c0_32, %c0_33] : memref<32x64xbf16, #tpu.memory_space<vmem>>, vector<32x64xbf16>
    %cst_34 = arith.constant dense<0.000000e+00> : vector<16x64xf32>
    %35 = tpu.matmul %33, %34, %cst_34 {dimension_numbers = #tpu.dot_dimension_numbers<[1], [0], [0], [1], [0, 0, 1, 1], [], []>} : vector<16x32xbf16>, vector<32x64xbf16>, vector<16x64xf32> -> vector<16x64xf32>
    %c0_35 = arith.constant 0 : index
    %c0_36 = arith.constant 0 : index
    %36 = vector.load %arg9[%c0_35, %c0_36] : memref<1x64xf32, #tpu.memory_space<vmem>>, vector<1x64xf32>
    %37 = vector.broadcast %36 : vector<1x64xf32> to vector<16x64xf32>
    %38 = arith.addf %35, %37 : vector<16x64xf32>
    %39 = vector.extract_strided_slice %38 {offsets = [0, 0], sizes = [16, 32], strides = [1, 1]} : vector<16x64xf32> to vector<16x32xf32>
    %c0_37 = arith.constant 0 : index
    %c0_38 = arith.constant 0 : index
    %c0_39 = arith.constant 0 : index
    %40 = vector.load %arg4[%c0_37, %c0_38, %c0_39] : memref<1x16x32xf32, #tpu.memory_space<vmem>>, vector<1x16x32xf32>
    %41 = vector.shape_cast %40 : vector<1x16x32xf32> to vector<16x32xf32>
    %42 = arith.addf %39, %41 : vector<16x32xf32>
    %43 = vector.extract_strided_slice %38 {offsets = [0, 32], sizes = [16, 32], strides = [1, 1]} : vector<16x64xf32> to vector<16x32xf32>
    %44 = arith.index_cast %arg0 : i32 to index
    %45 = memref.load %arg2[%44] : memref<2xi32, #tpu.memory_space<smem>>
    %c1_i32 = arith.constant 1 : i32
    %46 = arith.addi %arg1, %c1_i32 : i32
    %c16_i32 = arith.constant 16 : i32
    %47 = arith.muli %46, %c16_i32 : i32
    %48 = arith.cmpi sle, %47, %45 : i32
    %49 = arith.extui %48 : i1 to i32
    %c0_i32 = arith.constant 0 : i32
    %50 = arith.cmpi ne, %49, %c0_i32 : i32
    scf.if %50 {
      %c0_41 = arith.constant 0 : index
      %c0_42 = arith.constant 0 : index
      %c0_43 = arith.constant 0 : index
      %54 = vector.load %arg10[%c0_41, %c0_42, %c0_43] : memref<1x16x64xf32, #tpu.memory_space<vmem>>, vector<1x16x32xf32>
      %55 = vector.shape_cast %54 : vector<1x16x32xf32> to vector<16x32xf32>
      %56 = vector.shape_cast %42 : vector<16x32xf32> to vector<1x16x32xf32>
      tpu.vector_store %arg10[%c0_41, %c0_42, %c0_43], %56 {strides = array<i32>} : memref<1x16x64xf32, #tpu.memory_space<vmem>>, vector<1x16x32xf32>,
      %c0_44 = arith.constant 0 : index
      %c0_45 = arith.constant 0 : index
      %c32_46 = arith.constant 32 : index
      %57 = vector.load %arg10[%c0_44, %c0_45, %c32_46] : memref<1x16x64xf32, #tpu.memory_space<vmem>>, vector<1x16x32xf32>
      %58 = vector.shape_cast %57 : vector<1x16x32xf32> to vector<16x32xf32>
      %59 = vector.shape_cast %43 : vector<16x32xf32> to vector<1x16x32xf32>
      tpu.vector_store %arg10[%c0_44, %c0_45, %c32_46], %59 {strides = array<i32>} : memref<1x16x64xf32, #tpu.memory_space<vmem>>, vector<1x16x32xf32>,
    } else {
    }
    %true = arith.constant true
    %51 = arith.xori %48, %true : i1
    %52 = arith.extui %51 : i1 to i32
    %c0_i32_40 = arith.constant 0 : i32
    %53 = arith.cmpi ne, %52, %c0_i32_40 : i32
    scf.if %53 {
      %c16_i32_41 = arith.constant 16 : i32
      %54 = arith.muli %arg1, %c16_i32_41 : i32
      %55 = tpu.iota {dimensions = array<i32: 0>} : vector<16x1xi32>
      %56 = vector.broadcast %54 : i32 to vector<16x1xi32>
      %57 = arith.addi %56, %55 : vector<16x1xi32>
      %58 = vector.broadcast %45 : i32 to vector<16x1xi32>
      %59 = arith.cmpi slt, %57, %58 : vector<16x1xi32>
      %60 = arith.extui %59 : vector<16x1xi1> to vector<16x1xi32>
      %61 = arith.sitofp %60 : vector<16x1xi32> to vector<16x1xf32>
      %62 = vector.broadcast %61 : vector<16x1xf32> to vector<16x32xf32>
      %63 = arith.mulf %42, %62 : vector<16x32xf32>
      %c0_42 = arith.constant 0 : index
      %c0_43 = arith.constant 0 : index
      %c0_44 = arith.constant 0 : index
      %64 = vector.load %arg10[%c0_42, %c0_43, %c0_44] : memref<1x16x64xf32, #tpu.memory_space<vmem>>, vector<1x16x32xf32>
      %65 = vector.shape_cast %64 : vector<1x16x32xf32> to vector<16x32xf32>
      %66 = vector.shape_cast %63 : vector<16x32xf32> to vector<1x16x32xf32>
      tpu.vector_store %arg10[%c0_42, %c0_43, %c0_44], %66 {strides = array<i32>} : memref<1x16x64xf32, #tpu.memory_space<vmem>>, vector<1x16x32xf32>,
      %67 = vector.broadcast %61 : vector<16x1xf32> to vector<16x32xf32>
      %68 = arith.mulf %43, %67 : vector<16x32xf32>
      %c0_45 = arith.constant 0 : index
      %c0_46 = arith.constant 0 : index
      %c32_47 = arith.constant 32 : index
      %69 = vector.load %arg10[%c0_45, %c0_46, %c32_47] : memref<1x16x64xf32, #tpu.memory_space<vmem>>, vector<1x16x32xf32>
      %70 = vector.shape_cast %69 : vector<1x16x32xf32> to vector<16x32xf32>
      %71 = vector.shape_cast %68 : vector<16x32xf32> to vector<1x16x32xf32>
      tpu.vector_store %arg10[%c0_45, %c0_46, %c32_47], %71 {strides = array<i32>} : memref<1x16x64xf32, #tpu.memory_space<vmem>>, vector<1x16x32xf32>,
    } else {
    }
    return
  }
  func.func @transform_0(%arg0: i32, %arg1: i32, %arg2: memref<2xi32, #tpu.memory_space<smem>>) -> (i32, i32, i32, i32) {
    %c0_i32 = arith.constant 0 : i32
    %c0_i32_0 = arith.constant 0 : i32
    %c0_i32_1 = arith.constant 0 : i32
    return %arg0, %arg1, %c0_i32, %c0_i32_0 : i32, i32, i32, i32
  }
  func.func @transform_1(%arg0: i32, %arg1: i32, %arg2: memref<2xi32, #tpu.memory_space<smem>>) -> (i32, i32, i32) {
    %c0_i32 = arith.constant 0 : i32
    %c0_i32_0 = arith.constant 0 : i32
    return %arg0, %arg1, %c0_i32 : i32, i32, i32
  }
  func.func @transform_2(%arg0: i32, %arg1: i32, %arg2: memref<2xi32, #tpu.memory_space<smem>>) -> (i32, i32, i32) {
    %c0_i32 = arith.constant 0 : i32
    %c0_i32_0 = arith.constant 0 : i32
    return %arg0, %arg1, %c0_i32 : i32, i32, i32
  }
  func.func @transform_3(%arg0: i32, %arg1: i32, %arg2: memref<2xi32, #tpu.memory_space<smem>>) -> (i32, i32) {
    %c0_i32 = arith.constant 0 : i32
    %c0_i32_0 = arith.constant 0 : i32
    %c0_i32_1 = arith.constant 0 : i32
    return %c0_i32, %c0_i32_0 : i32, i32
  }
  func.func @transform_4(%arg0: i32, %arg1: i32, %arg2: memref<2xi32, #tpu.memory_space<smem>>) -> (i32, i32) {
    %c0_i32 = arith.constant 0 : i32
    %c0_i32_0 = arith.constant 0 : i32
    %c0_i32_1 = arith.constant 0 : i32
    return %c0_i32, %c0_i32_0 : i32, i32
  }
  func.func @transform_5(%arg0: i32, %arg1: i32, %arg2: memref<2xi32, #tpu.memory_space<smem>>) -> (i32, i32) {
    %c0_i32 = arith.constant 0 : i32
    %c0_i32_0 = arith.constant 0 : i32
    %c0_i32_1 = arith.constant 0 : i32
    return %c0_i32, %c0_i32_0 : i32, i32
  }
  func.func @transform_6(%arg0: i32, %arg1: i32, %arg2: memref<2xi32, #tpu.memory_space<smem>>) -> (i32, i32) {
    %c0_i32 = arith.constant 0 : i32
    %c0_i32_0 = arith.constant 0 : i32
    %c0_i32_1 = arith.constant 0 : i32
    return %c0_i32, %c0_i32_0 : i32, i32
  }
  func.func @transform_7(%arg0: i32, %arg1: i32, %arg2: memref<2xi32, #tpu.memory_space<smem>>) -> (i32, i32, i32) {
    %c0_i32 = arith.constant 0 : i32
    %c0_i32_0 = arith.constant 0 : i32
    return %arg0, %arg1, %c0_i32 : i32, i32, i32
  }
}

</mosaic_0001>

<bundles_post_ra>
// kernel: tpu_custom_call.1
= control target key start
LH: loop header
LB: loop body
LE: loop exit
PB: predicated region body
PF: predicated region fallthrough
CT: control target
= control target key end

     0   :  { %s1289_s30 = smov [#allocation4]   ;;  %s1625_s0 = inlined_call_operand.vmem [shape: s32[2], index: 0, kind: input, shape index: {}]   ;;  %s1626_s1 = inlined_call_operand.vmem [shape: bf16[2,3,20,32], index: 1, kind: input, shape index: {}]   ;;  %s1627_s2 = inlined_call_operand.vmem [shape: f32[2,48,32], index: 2, kind: input, shape index: {}]   ;;  %s1628_s3 = inlined_call_operand.vmem [shape: bf16[2,48,64], index: 3, kind: input, shape index: {}]   ;;  %s1629_s4 = inlined_call_operand.vmem [shape: bf16[224,64], index: 4, kind: input, shape index: {}]   ;;  %s1630_s5 = inlined_call_operand.vmem [shape: bf16[32,64], index: 5, kind: input, shape index: {}]   ;;  %s1631_s6 = inlined_call_operand.vmem [shape: f32[1,64], index: 6, kind: input, shape index: {}]   ;;  %s1632_s7 = inlined_call_operand.vmem [shape: f32[1,64], index: 7, kind: input, shape index: {}]   ;;  %s1633_s8 = inlined_call_operand.hbm [shape: f32[2,48,64], index: 8, kind: output, shape index: {}]  }
   0x1   :  { %s14_s29 = sshll.u32 %s1625_s0, 4  ;;  %s15_s29 = int_to_ptr.vmem [resolvable:$true] %s14_s29 }
   0x2   :  { %17 = dma.vmem_to_smem %s15_s29, 16, %s1289_s30, [#allocation3] }
   0x3   :  { %1251 = dma.done.wait [#allocation3], 16 }
   0x4   :  { %1252 = vsyncadd [#allocation3], 4294967280 }
   0x5   :  { %20 = sfence }
   0x6   :  { %21 = vsyncpa [#allocation6], 0 }
   0x7   :  { %23 = vsyncpa [#allocation6 + $0x1], 0  ;;  %s1344_s9 = smov 0   ;;  %s1346_s10 = smov 0  }
   0x8   :  { %s1348_s11 = smov 0   ;;  %s1350_s12 = smov 0  }
   0x9   :  { %s1352_s13 = smov 0   ;;  %s1354_s14 = smov 0  }
   0xa   :  { %s1356_s0 = smov 0   ;;  %s1358_s15 = smov 0  }
   0xb LB: > { %1638 = sst [smem:[#allocation9_spill]] %s1279_s14  ;;  %s963_s16 = sadd.s32 4294967295, %s1287_s15   ;;  %s1287_s15 = sphi %s1358_s15, %s29_s15   ;;  %s1283_s0 = sphi %s1356_s0, %s1653_s0   ;;  %s1279_s14 = sphi %s1354_s14, %s1652_s14   ;;  %s1275_s13 = sphi %s1352_s13, %s1651_s13   ;;  %s1271_s12 = sphi %s1350_s12, %s1650_s12   ;;  %s1267_s11 = sphi %s1348_s11, %s1656_s11   ;;  %s1263_s10 = sphi %s1346_s10, %s1655_s10   ;;  %s1259_s9 = sphi %s1344_s9, %s1654_s9  }
   0xc   : > { %1639 = sst [smem:[#allocation10_spill]] %s1283_s0  ;;  %s964_s17 = sadd.s32 4294967294, %s1287_s15  }
   0xd   : > { %s38_s18 = sadd.s32 1, %s1279_s14  ;;  %s41_s19 = sadd.s32 1, %s1283_s0 }
   0xe   : > { %p39_p0 = scmp.ge.s32.totalorder %s38_s18, 3  ;;  %p228_p1 = scmp.ne.s32.totalorder %s1267_s11, %s1263_s10 }
   0xf   : > { %p229_p2 = scmp.eq.s32.totalorder %s963_s16, 5  ;;  %p234_p5 = scmp.ne.s32.totalorder %s1263_s10, %s1259_s9 }
  0x10   : > { %s1658_s18 = smov (%p39_p0, %s38_s18), 0  ;;  %s1660_s19 = smov (!%p39_p0, %s41_s19), %s1283_s0 }
  0x11   : > { %1640 = sst [smem:[#allocation11_spill]] %s1658_s18  ;;  %s214_s20 = ssub.s32 %s1279_s14, %s1658_s18 }
  0x12   : > { %p1395_p3 = por %p229_p2, %p228_p1  ;;  %p43_p4 = scmp.ge.s32.totalorder %s1660_s19, 2 }
  0x13   : > { %p235_p6 = scmp.eq.s32.totalorder %s964_s17, 5  ;;  %p967_p7 = scmp.ge.s32.totalorder %s1287_s15, 1 }
  0x14   : > { %s1662_s19 = smov (%p43_p4, %s1660_s19), 0  ;;  %p303_p9 = scmp.lt.s32.totalorder %s1287_s15, 7 }
  0x15   : > { %1642 = sst [smem:[#allocation12_spill]] %s1662_s19  ;;  %p1404_p8 = por %p235_p6, %p234_p5 }
  0x16   : > { %s213_s23 = ssub.s32 %s1283_s0, %s1662_s19  ;;  %s218_s24 = sadd.s32 1, %s1267_s11 }
  0x17   : > { %s215_s25 = sor.u32 %s214_s20, %s213_s23  ;;  %p304_p10 = pnand %p967_p7, %p303_p9 }
  0x18   : > { %p216_p11 = scmp.eq.s32.totalorder %s215_s25, 0  ;;  %p357_p12 = scmp.lt.s32.totalorder (!%p304_p10), %s1275_s13, 1 }
  0x19   : > { %307 = sbr.rel (%p304_p10) target bundleno = 660 (0x294), region = 48  ;;  %p359_p13 = scmp.lt.s32.totalorder (!%p304_p10), %s1271_s12, 2 }
  0x1a   : > { %s1413_s26 = scalar_select %p216_p11, %s1267_s11, %s218_s24  }
  0x1b   : > { %s1423_s30 = sshll.u32 (!%p304_p10), %s1271_s12, 1  ;;  %s354_s24 = sand.u32 (!%p304_p10), 1, %s1263_s10  }
  0x1c   : > { %p369_p0 = scmp.lt.s32.totalorder (!%p304_p10), %s1423_s30, 5  ;;  %s1435_s0 = sshll.u32 (!%p304_p10), %s354_s24, 4 }
  0x1d   : > { %s1291_s20 = smov (!%p304_p10), 32  }
  0x1e   : > { %s1418_s27 = scalar_select %p357_p12, %s1275_s13, 1  ;;  %v1072_v0 = vld [vmem:[%s1629_s4 + $0x38] sm:$0xff]  ;;  %vm438_vm0 = vcmask 1042432   ;;  %vm439_vm1 = vcmask 1046532   ;;  %v1071_v1 = vld [vmem:[%s1629_s4 + $0x30] sm:$0xff]  ;;  %v1070_v3 = vld [vmem:[%s1629_s4 + $0x28] sm:$0xff] }
  0x1f   : > { %s360_s28 = scalar_select %p359_p13, %s1271_s12, 2  ;;  %664 = vmatpush.bf16.msra.mxu0 %v1072_v0  ;;  %vm396_vm2 = vsmask.f32 3328  ;;  %vm1442_vm3 = vmor %vm438_vm0, %vm439_vm1  ;;  %vm397_vm4 = vsmask.f32 7440  ;;  %vm390_vm9 = vcmask 257024  }
  0x20   : > { %s1084_s29 = smul.u32 9, %s1418_s27  ;;  %vm460_vm5 = vsmask.f32 2304  ;;  %vm1466_vm6 = vmor %vm396_vm2, %vm397_vm4  ;;  %vm461_vm7 = vsmask.f32 6416  ;;  %v1069_v59 = vld [vmem:[%s1629_s4 + $0x20] sm:$0xff] }
  0x21   : > { %s1083_s16 = smul.u32 3, %s360_s28  ;;  %vm1479_vm8 = vmor %vm460_vm5, %vm461_vm7  ;;  %v1078_v60 = vld [vmem:[%s1629_s4 + $0x68] sm:$0xff]  ;;  %v1068_v61 = vld [vmem:[%s1629_s4 + $0x18] sm:$0xff]  ;;  %vm506_vm10 = vcmask 1041408   ;;  %vm507_vm11 = vcmask 1045508   ;;  %vm429_vm13 = vcmask 519424  }
  0x22   : > { %s1085_s14 = smul.u32 6, %s1418_s27  ;;  %680 = vmatpush.bf16.msra.mxu1 %v1078_v60  ;;  %v1077_v62 = vld [vmem:[%s1629_s4 + $0x60] sm:$0xff]  ;;  %v1067_v0 = vld [vmem:[%s1629_s4 + $0x10] sm:$0xff]  ;;  %vm508_vm12 = vmor %vm506_vm10, %vm507_vm11  ;;  %vm454_vm14 = vcmask 781824   ;;  %vm497_vm15 = vcmask 1044224   ;;  %vm530_vm0 = vcmask 781568  }
  0x23   : > { %s363_s23 = sadd.s32 %s1084_s29, %s1083_s16  ;;  %665 = vmatpush.bf16.msra.mxu0 %v1071_v1  ;;  %s1292_s29 = smov 96   ;;  %v1076_v1 = vld [vmem:[%s1629_s4 + $0x58] sm:$0xff]  ;;  %vm660_vm1 = vcmask 785408   ;;  %vm763_vm10 = vcmask 261120  }
  0x24   : > { %s969_s18 = sshll.u32 %s363_s23, 2 }
  0x25   : > { %s1440_s17 = scalar_lea.vmem %s1626_s1, %s969_s18  ;;  %s1290_s18 = smov 64  }
  0x26   : > { %v432_v4 = vld [vmem:[%s1440_s17] sm:$0xe]  ;;  %v433_v5 = vld [vmem:[%s1440_s17 + $0x4] sm:$0xf]  ;;  %v434_v14 = vld [vmem:[%s1440_s17 + $0x8] sm:$0x1]  ;;  %681 = vmatpush.bf16.msra.mxu1 %v1077_v62 }
  0x27   : > { %v393_v6 = vld [vmem:[%s1440_s17] sm:$0xf]  ;;  %v974_v7 = vrot.slane %v432_v4, 9  ;;  %v443_v8 = vrot.slane %v433_v5, 5  ;;  %v394_v9 = vld [vmem:[%s1440_s17 + $0x4] sm:$0xf]  ;;  %666 = vmatpush.bf16.msra.mxu0 %v1070_v3 }
  0x28   : > { %v400_v10 = vshrl.u32 %v393_v6, 16  ;;  %v403_v11 = vshll.u32 %v393_v6, 16  ;;  %v409_v12 = vshll.u32 %v394_v9, 16  ;;  %v413_v13 = vshrl.u32 %v394_v9, 16  ;;  %v395_v15 = vld [vmem:[%s1440_s17 + $0x8] sm:$0x1] }
  0x29   : > { %v444_v16 = vsel %vm1442_vm3, %v974_v7, %v443_v8  ;;  %v445_v19 = vrot.slane %v443_v8, 4  ;;  %v457_v20 = vld [vmem:[%s1440_s17] sm:$0xe]  ;;  %v446_v23 = vrot.slane %v434_v14, 5  ;;  %s370_s16 = scalar_select %p369_p0, %s1423_s30, 5  ;;  %v419_v31 = vshll.u32 %v395_v15, 16 }
  0x2a   : > { %v402_v17 = vrot.slane %v400_v10, 4  ;;  %v405_v18 = vrot.slane %v403_v11, 5  ;;  %448 = vrot.lane.b32.xlu1 %v444_v16, %s1290_s18  ;;  %v411_v21 = vrot.slane %v409_v12, 5  ;;  %v415_v22 = vrot.slane %v413_v13, 4  ;;  %v458_v24 = vld [vmem:[%s1440_s17 + $0x4] sm:$0xf]  ;;  %682 = vmatpush.bf16.msra.mxu1 %v1076_v1 }
  0x2b   : > { %v464_v26 = vshrl.u32 %v457_v20, 16  ;;  %v467_v27 = vshll.u32 %v457_v20, 16  ;;  %v473_v28 = vshrl.u32 %v458_v24, 16  ;;  %v476_v32 = vshll.u32 %v458_v24, 16  ;;  %v459_v33 = vld [vmem:[%s1440_s17 + $0x8] sm:$0x3]  ;;  %s1473_s27 = sadd.s32 %s1085_s14, %s370_s16  ;;  %667 = vmatpush.bf16.msra.mxu0 %v1069_v59 }
  0x2c   : > { %v406_v25 = vor.u32 %v405_v18, %v402_v17  ;;  %v416_v30 = vor.u32 %v415_v22, %v411_v21  ;;  %v447_v38 = vsel %vm1442_vm3, %v445_v19, %v446_v23  ;;  %v483_v42 = vshrl.u32 %v459_v33, 16  ;;  %s973_s23 = sshll.u32 %s1473_s27, 2  ;;  %v388_v58 = vld [vmem:[%s1440_s17] sm:$0xf]  ;;  %v389_v63 = vld [vmem:[%s1440_s17 + $0x4] sm:$0xf] }
  0x2d   : > { %v466_v35 = vrot.slane %v464_v26, 5  ;;  %v469_v36 = vrot.slane %v467_v27, 6  ;;  %v475_v37 = vrot.slane %v473_v28, 5  ;;  %v478_v39 = vrot.slane %v476_v32, 6  ;;  %s384_s19 = scalar_lea.vmem %s1628_s3, %s973_s23  ;;  %391 = vst.msk [vmem:[#allocation2] sm:$0xf] %vm390_vm9, %v388_v58 }
  0x2e   : > { %v407_v34 = vrot.slane %v406_v25, 4  ;;  %v486_v43 = vshll.u32 %v459_v33, 16  ;;  %v421_v44 = vrot.slane %v419_v31, 5  ;;  %v417_v47 = vrot.slane %v416_v30, 4  ;;  %v521_v55 = vld [vmem:[%s384_s19 + $0x4] sm:$0xf] }
  0x2f   : > { %v470_v41 = vor.u32 %v469_v36, %v466_v35  ;;  %v479_v46 = vor.u32 %v478_v39, %v475_v37  ;;  %v485_v49 = vrot.slane %v483_v42, 5  ;;  %v520_v57 = vld [vmem:[%s384_s19] sm:$0xf]  ;;  %668 = vmatpush.bf16.msra.mxu0 %v1068_v61  ;;  %392 = vst.msk [vmem:[#allocation2 + $0x8] sm:$0xf] %vm390_vm9, %v389_v63  ;;  %v1066_v3 = vld [vmem:[%s1629_s4 + $0x8] sm:$0xff] }
  0x30   : > { %v412_v40 = vsel %vm1466_vm6, %v407_v34, %v411_v21  ;;  %v488_v50 = vrot.slane %v486_v43, 6  ;;  %v422_v52 = vsel %vm1466_vm6, %v417_v47, %v421_v44  ;;  %v501_v2 = vld [vmem:[%s1440_s17 + $0x4] sm:$0xf]  ;;  %v502_v4 = vld [vmem:[%s1440_s17 + $0x8] sm:$0x3]  ;;  %v1075_v5 = vld [vmem:[%s1629_s4 + $0x50] sm:$0xff] }
  0x31   : > { %423 = vrot.lane.b32.xlu0 %v412_v40, %s1291_s20  ;;  %v471_v48 = vrot.slane %v470_v41, 4  ;;  %v481_v53 = vrot.slane %v479_v46, 4  ;;  %v511_v6 = vrot.slane %v501_v2, 6  ;;  %v514_v7 = vrot.slane %v502_v4, 6  ;;  %v500_v8 = vld [vmem:[%s1440_s17] sm:$0xc]  ;;  %683 = vmatpush.bf16.msra.mxu1 %v1075_v5 }
  0x32   : > { %450 = vrot.lane.b32.xlu1 %v447_v38, %s1290_s18  ;;  %v489_v54 = vor.u32 %v488_v50, %v485_v49  ;;  %v975_v9 = vrot.slane %v500_v8, 10  ;;  %v1065_v13 = vld [vmem:[%s1629_s4] sm:$0xff]  ;;  %v1074_v14 = vld [vmem:[%s1629_s4 + $0x48] sm:$0xff]  ;;  %s1552_s23 = sld [smem:[#allocation4 + %s1275_s13]]  ;;  %s971_s25 = sshll.u32 %s1473_s27, 3 }
  0x33   : > { %v480_v51 = vsel %vm1479_vm8, %v471_v48, %v479_v46  ;;  %669 = vmatpush.bf16.msra.mxu0 %v1067_v0  ;;  %v513_v10 = vrot.slane %v511_v6, 4  ;;  %v1073_v15 = vld [vmem:[%s1629_s4 + $0x40] sm:$0xff]  ;;  %v1080_v1 = vld [vmem:[%s1630_s5 + $0x8] sm:$0xff]  ;;  %s374_s19 = scalar_lea.vmem %s1627_s2, %s971_s25 }
  0x34   : > { %491 = vrot.lane.b32.xlu2 %v480_v51, %s1292_s29  ;;  %v490_v56 = vsel %vm1479_vm8, %v481_v53, %v489_v54  ;;  %v512_v11 = vsel %vm508_vm12, %v975_v9, %v511_v6  ;;  %v1165_v31 = vld [vmem:[%s1631_s6] ss:$0 sm:$0xff]  ;;  %773 = vmatpush.bf16.msra.mxu2 %v1080_v1 }
  0x35   : > { %v515_v12 = vsel %vm508_vm12, %v513_v10, %v514_v7  ;;  %518 = vst.msk [vmem:[#allocation2 + $0x4] sm:$0xf] %vm390_vm9, %v512_v11  ;;  %684 = vmatpush.bf16.msra.mxu1 %v1074_v14  ;;  %v1079_v2 = vld [vmem:[%s1630_s5] sm:$0xff] }
  0x36   : > { %519 = vst.msk [vmem:[#allocation2 + $0xc] sm:$0xf] %vm390_vm9, %v515_v12  ;;  %v1166_v10 = vld [vmem:[%s1632_s7] ss:$0 sm:$0xff] }
  0x37   : > { %670 = vmatpush.bf16.msra.mxu0 %v1066_v3  ;;  %v781_v12 = vld [vmem:[%s374_s19] sm:$0xff] }
  0x38   : > { %774 = vmatpush.bf16.msra.mxu2 %v1079_v2 }
  0x39   : > { %425 = vrot.lane.b32.xlu0 %v422_v52, %s1291_s20  ;;  %685 = vmatpush.bf16.msra.mxu1 %v1073_v15 }
  0x3a   : > { %526 = vrot.lane.b32.xlu1 %v521_v55, %s1291_s20 }
  0x3b   : > { %671 = vmatpush.bf16.msra.mxu0 %v1065_v13 }
  0x3c   : > { %493 = vrot.lane.b32.xlu2 %v490_v56, %s1292_s29 }
  0x41   : > { %524 = vrot.lane.b32.xlu0 %v520_v57, %s1291_s20 }
  0x8e   : > { %v492_v17 = vpop.permute.xlu2 %491 }
  0x96   : > { %v494_v21 = vpop.permute.xlu2 %493 }
  0x9c   : > { %v449_v16 = vpop.permute.xlu1 %448 }
  0xa3   : > { %v424_v18 = vpop.permute.xlu0 %423 }
  0xa4   : > { %430 = vst.msk [vmem:[#allocation2] sm:$0xf] %vm429_vm13, %v424_v18  ;;  %v451_v19 = vpop.permute.xlu1 %450 }
  0xa5   : > { %455 = vst.msk [vmem:[#allocation2] sm:$0xf] %vm454_vm14, %v449_v16  ;;  %v782_v16 = vld [vmem:[%s374_s19 + $0x8] sm:$0xff] }
  0xa6   : > { %498 = vst.msk [vmem:[#allocation2] sm:$0xf] %vm497_vm15, %v492_v17 }
  0xab   : > { %v426_v20 = vpop.permute.xlu0 %425 }
  0xac   : > { %431 = vst.msk [vmem:[#allocation2 + $0x8] sm:$0xf] %vm429_vm13, %v426_v20  ;;  %v527_v22 = vpop.permute.xlu1 %526 }
  0xad   : > { %456 = vst.msk [vmem:[#allocation2 + $0x8] sm:$0xf] %vm454_vm14, %v451_v19  ;;  %v978_v24 = vld [vmem:[#allocation2] sm:$0xf] }
  0xae   : > { %499 = vst.msk [vmem:[#allocation2 + $0x8] sm:$0xf] %vm497_vm15, %v494_v21 }
  0xaf   : > { %532 = vst.msk [vmem:[#allocation2 + $0xc] sm:$0xf] %vm530_vm0, %v527_v22 }
  0xb3   : > { %v525_v23 = vpop.permute.xlu0 %524 }
  0xb4   : > { %531 = vst.msk [vmem:[#allocation2 + $0x4] sm:$0xf] %vm530_vm0, %v525_v23 }
  0xb5   : > { %v1064_v25 = vld [vmem:[#allocation2 + $0x4] sm:$0xf0] }
  0xb6   : > { %v979_v26 = vor.u32 %v1064_v25, %v978_v24  ;;  %v980_v27 = vld [vmem:[#allocation2 + $0x8] sm:$0xf0] }
  0xb8   : > { %672 = vmatmul.bf16.vlgmr.msra.gmra.mxu0 %v979_v26 }
  0xbb   : > { %v1063_v28 = vld [vmem:[#allocation2 + $0x4] sm:$0xf] }
  0xbc   : > { %v983_v29 = vor.u32 %v1063_v28, %v980_v27 }
  0xbe   : > { %1040 = vmatmul.msk.bf16.vlgmr.msra.gmra.mxu1 %vm660_vm1, %v983_v29 }
 0x135   : > { %v673_v30 = vpop.f32.mrf.mxu0 }
 0x136   : > { %v674_v32 = vadd.f32 %v1165_v31, %v673_v30 }
 0x13b   : > { %v687_v33 = vpop.f32.mrf.mxu1 }
 0x13c   : > { %v688_v34 = vadd.f32 %v687_v33, %v674_v32 }
 0x13d   : > { %v675_v36 = vpop.f32.mrf.mxu0 }
 0x13e   : > { %v1041_v35 = vmul.f32 -1.442695, %v688_v34  ;;  %v676_v37 = vadd.f32 %v1165_v31, %v675_v36 }
 0x140   : > { %1167 = vpow2.f32 %v1041_v35 }
 0x143   : > { %v689_v38 = vpop.f32.mrf.mxu1 }
 0x144   : > { %v690_v39 = vadd.f32 %v689_v38, %v676_v37 }
 0x146   : > { %v1168_v40 = vpop.eup %1167  ;;  %v1042_v41 = vmul.f32 -1.442695, %v690_v39 }
 0x147   : > { %v700_v42 = vadd.f32 1.0, %v1168_v40 }
 0x148   : > { %1169 = vpow2.f32 %v1042_v41 }
 0x149   : > { %1171 = vrcp.f32 %v700_v42  ;;  %v713_v48 = vand.u32 2147483648, %v700_v42  ;;  %v711_v50 = vand.u32 2147483647, %v700_v42  ;;  %vm707_vm3 = vweird.f32 %v700_v42 }
 0x14b   : > { %v714_v53 = vor.u32 1.1754944e-38, %v713_v48  ;;  %vm712_vm5 = vcmp.eq.f32.partialorder %v711_v50, 8.507059e+37 }
 0x14e   : > { %v1170_v43 = vpop.eup %1169 }
 0x14f   : > { %v1172_v44 = vpop.eup %1171  ;;  %v701_v45 = vadd.f32 1.0, %v1170_v43 }
 0x150   : > { %v703_v46 = vmul.f32 %v1172_v44, %v700_v42  ;;  %vm708_vm2 = vweird.f32 %v1172_v44 }
 0x151   : > { %1173 = vrcp.f32 %v701_v45  ;;  %vm709_vm4 = vmor %vm707_vm3, %vm708_vm2  ;;  %v728_v58 = vand.u32 2147483648, %v701_v45  ;;  %v726_v60 = vand.u32 2147483647, %v701_v45  ;;  %vm722_vm7 = vweird.f32 %v701_v45 }
 0x152   : > { %v704_v47 = vsub.f32 1.0, %v703_v46  ;;  %1175 = vtanh.f32 %v688_v34 }
 0x153   : > { %v729_v62 = vor.u32 1.1754944e-38, %v728_v58  ;;  %vm727_vm9 = vcmp.eq.f32.partialorder %v726_v60, 8.507059e+37  ;;  %1177 = vtanh.f32 %v690_v39 }
 0x154   : > { %v705_v49 = vmul.f32 %v1172_v44, %v704_v47 }
 0x156   : > { %v706_v51 = vadd.f32 %v1172_v44, %v705_v49 }
 0x157   : > { %v1174_v52 = vpop.eup %1173 }
 0x158   : > { %v710_v54 = vsel %vm709_vm4, %v1172_v44, %v706_v51  ;;  %v718_v55 = vmul.f32 %v1174_v52, %v701_v45  ;;  %vm723_vm6 = vweird.f32 %v1174_v52  ;;  %v1176_v4 = vpop.eup %1175 }
 0x159   : > { %v715_v56 = vsel %vm712_vm5, %v714_v53, %v710_v54  ;;  %vm724_vm8 = vmor %vm722_vm7, %vm723_vm6  ;;  %v1178_v5 = vpop.eup %1177 }
 0x15a   : > { %734 = vrot.lane.b32.xlu2 %v715_v56, %s1292_s29  ;;  %v719_v57 = vsub.f32 1.0, %v718_v55 }
 0x15c   : > { %v720_v59 = vmul.f32 %v1174_v52, %v719_v57 }
 0x15e   : > { %v721_v61 = vadd.f32 %v1174_v52, %v720_v59 }
 0x160   : > { %v725_v63 = vsel %vm724_vm8, %v1174_v52, %v721_v61 }
 0x161   : > { %v730_v0 = vsel %vm727_vm9, %v729_v62, %v725_v63 }
 0x162   : > { %736 = vrot.lane.b32.xlu0 %v730_v0, %s1292_s29  ;;  %s1081_s29 = sshll.u32 %s1271_s12, 4  ;;  %s1562_s12 = scalar_lea.vmem [#allocation5], %s1435_s0 }
 0x163   : > { %s1082_s17 = sadd.s32 16, %s1081_s29 }
 0x164   : > { %p1053_p1 = scmp.gt.s32.totalorder %s1082_s17, %s1552_s23 }
 0x1b4   : > { %v735_v3 = vpop.permute.xlu2 %734 }
 0x1b5   : > { %v740_v7 = vmul.f32 %v1176_v4, %v735_v3 }
 0x1d4   : > { %v737_v6 = vpop.permute.xlu0 %736 }
 0x1d5   : > { %v741_v8 = vmul.f32 %v1178_v5, %v737_v6 }
 0x1d7   : > { %v742_v9 = vpack.c.bf16 %v741_v8, %v740_v7 }
 0x1d9   : > { %1051 = vmatmul.msk.bf16.vlgmr.msra.gmra.mxu2 %vm763_vm10, %v742_v9 }
 0x25c   : > { %v776_v11 = vpop.f32.mrf.mxu2 }
 0x25d   : > { %v777_v13 = vadd.f32 %v1166_v10, %v776_v11 }
 0x25f   : > { %v783_v14 = vadd.f32 %v781_v12, %v777_v13 }
 0x263   : > { %791 = sbr.rel (%p1053_p1) target bundleno = 620 (0x26c), region = 52 }
 0x264   : > { %v778_v15 = vpop.f32.mrf.mxu2 }
 0x265   : > { %v779_v17 = vadd.f32 %v1166_v10, %v778_v15 }
 0x267   : > { %v784_v18 = vadd.f32 %v782_v16, %v779_v17 }
 0x268   : > { %792 = vst.msk [vmem:[%s1562_s12] sm:$0xff] %vm763_vm10, %v783_v14  ;;  %vm794_vm11 = vcmask 523520  }
 0x269   : > { %793 = vst.msk [vmem:[%s1562_s12 + $0x8] sm:$0xff] %vm763_vm10, %v784_v18 }
 0x26a   : > { %795 = vst.msk [vmem:[%s1562_s12] sm:$0xff] %vm794_vm11, %v777_v13 }
 0x26b   : > { %796 = vst.msk [vmem:[%s1562_s12 + $0x8] sm:$0xff] %vm794_vm11, %v779_v17 }
 0x26c PF: > { %p1054_p2 = scmp.le.s32.totalorder %s1082_s17, %s1552_s23 }
 0x26e   : > { %800 = sbr.rel (%p1054_p2) target bundleno = 641 (0x281), region = 56 }
 0x273   : > { %v802_v19 = vlaneseq  ;;  %v805_v20 = vstv %s1081_s29  ;;  %v808_v22 = vstv %s1552_s23  ;;  %v1293_v26 = vmov 0.0  }
 0x274   : > { %vm821_vm14 = vcmask 523520  }
 0x275   : > { %v803_v21 = vshrl.u32 %v802_v19, 7 }
 0x277   : > { %v806_v23 = vadd.s32 %v805_v20, %v803_v21  ;;  %v804_v24 = vadd.s32 8, %v803_v21 }
 0x279   : > { %vm809_vm12 = vcmp.lt.s32.totalorder %v806_v23, %v808_v22  ;;  %v807_v25 = vadd.s32 %v805_v20, %v804_v24 }
 0x27a   : > { %v1056_v27 = vsel %vm809_vm12, 1.0, %v1293_v26 }
 0x27b   : > { %v815_v28 = vmul.f32 %v1056_v27, %v783_v14  ;;  %v819_v29 = vmul.f32 %v1056_v27, %v777_v13  ;;  %vm810_vm13 = vcmp.lt.s32.totalorder %v807_v25, %v808_v22 }
 0x27c   : > { %v1057_v30 = vsel %vm810_vm13, 1.0, %v1293_v26 }
 0x27d   : > { %817 = vst.msk [vmem:[%s1562_s12] sm:$0xff] %vm763_vm10, %v815_v28  ;;  %v816_v31 = vmul.f32 %v1057_v30, %v784_v18  ;;  %v820_v32 = vmul.f32 %v1057_v30, %v779_v17 }
 0x27e   : > { %822 = vst.msk [vmem:[%s1562_s12] sm:$0xff] %vm821_vm14, %v819_v29 }
 0x27f   : > { %818 = vst.msk [vmem:[%s1562_s12 + $0x8] sm:$0xff] %vm763_vm10, %v816_v31 }
 0x280   : > { %823 = vst.msk [vmem:[%s1562_s12 + $0x8] sm:$0xff] %vm821_vm14, %v820_v32 }
 0x281 PF: > { %s1086_s0 = smul.u32 6, %s1275_s13  ;;  %s839_s27 = sshll.u32 %s1562_s12, 4  ;;  %s840_s27 = int_to_ptr.vmem [resolvable:$true] %s839_s27 }
 0x282   : > { %s825_s20 = scalar_lea.sflag [#allocation6], %s354_s24 }
 0x283   : > { %s836_s16 = sadd.s32 %s1086_s0, %s1423_s30  ;;  %s1211_s30 = scalar_lea.hbm %s1633_s8, 96 }
 0x284   : > { %s1060_s29 = sshll.u32 %s836_s16, 3 }
 0x285   : > { %s838_s25 = scalar_lea.hbm %s1633_s8, %s1060_s29 }
 0x286   : > { %s841_s28 = sshll.u32 %s838_s25, 4  ;;  %s842_s28 = int_to_ptr.hbm [resolvable:$true] %s841_s28 }
 0x287   : > { %s1205_s19 = sshra.s32 %s842_s28, 4  ;;  %s1206_s19 = int_to_ptr.hbm [resolvable:$true] %s1205_s19 }
 0x288   : > { %s1207_s14 = scalar_lea.hbm %s1206_s19, 16  ;;  %p1212_p7 = scmp.lt.s32.totalorder %s1206_s19, %s1633_s8 }
 0x289   : > { %p1208_p4 = scmp.ne.s32.totalorder %s1206_s19, %s1207_s14  ;;  %p1213_p9 = scmp.lt.s32.totalorder %s1211_s30, %s1207_s14 }
 0x28b   : > { %p1209_p5 = pnand %p1208_p4, %p1395_p3  ;;  %p1214_p10 = por %p1213_p9, %p1212_p7 }
 0x28d   : > { %p1210_p6 = pneg %p1209_p5 }
 0x28f   : > { %p1215_p11 = pnand %p1214_p10, %p1210_p6 }
 0x291   : > { %1218 = shalt.err (!%p1215_p11)
}
 0x292   : > { %s1294_s24 = smov 128   ;;  %s1295_s16 = smov 8  }
 0x293   : > { %1087 = dma.vmem_to_hbm [thread:$0]  (%p1395_p3), %s840_s27, 256, %s842_s28, %s825_s20, %s1294_s24, %s1294_s24, %s1295_s16  }
 0x294 PF: > { %p1093_p12 = scmp.ge.s32.totalorder %s1287_s15, 2  ;;  %s856_s29 = sand.u32 1, %s1259_s9  }
 0x295   : > { %s857_s23 = scalar_lea.sflag [#allocation6], %s856_s29 }
 0x296   : > { %p1090_p13 = pnand %p1093_p12, %p1404_p8 }
 0x298   : > { %p1091_p0 = pneg %p1090_p13 }
 0x29a   : > { %1254 = dma.done.wait (%p1091_p0), %s857_s23, 256  }
 0x29b   : > { %1256 = vsyncadd (%p1091_p0), %s857_s23, 4294967040  ;;  %s29_s15 = sadd.s32 1, %s1287_s15   ;;  %s1650_s12 = sld [smem:[#allocation9_spill]] }
 0x29c   : > { %p26_p1 = scmp.ge.s32.totalorder %s29_s15, 8   ;;  %s1651_s13 = sld [smem:[#allocation10_spill]] }
 0x29d   : > { %s1652_s14 = sld [smem:[#allocation11_spill]]  ;;  %s1654_s9 = smov %s1263_s10 }
 0x29e   : > { %s1653_s0 = sld [smem:[#allocation12_spill]]  ;;  %s1655_s10 = smov %s1267_s11 }
 0x29f   : > { %s1656_s11 = smov %s1413_s26  ;;  %28 = sbr.rel (!%p26_p1) target bundleno = 11 (0xb), region = 97 }
 0x2a4   :  { %863 = vsyncpa [#allocation6], 1 }
 0x2a5   :  { %865 = vsyncpa [#allocation6 + $0x1], 1 }

</bundles_post_ra>
